<compile_context>
chip_gen: v7x
topology: tpu7x:2x2x1
jax: 0.10.0
libtpu: 0.0.40
codegen_flags: <defaults>
</compile_context>

<pallas_src>
import functools

import jax
import jax.numpy as jnp
from jax.experimental import pallas as pl
from jax.experimental.pallas import tpu as pltpu

LANE = 128      # TPU lane width: feature (last) dims padded to multiples of this.
SUBLANE_BF16 = 16  # bf16 sublane packing: keep batch tiles a multiple of 16.
MAX_TILE_ROWS = 1024


def _round_up(n, m):
    return ((n + m - 1) // m) * m


def _num_tensorcores():
    """2 TensorCores per chip on v7x, else 1 (v5e/v6e)."""
    try:
        kind = jax.devices()[0].device_kind.lower()
    except Exception:
        return 1
    return 2 if "v7" in kind else 1


def _pick_tile(batch, n_cores):
    """One tile per core when the batch fits; cap tiles at ~1024 rows for big batches."""
    steps = max(n_cores, pl.cdiv(batch, MAX_TILE_ROWS))
    return _round_up(pl.cdiv(batch, steps), SUBLANE_BF16)


def _mlp_kernel(x_ref, w1_ref, b1_ref, w2_ref, b2_ref, o_ref):
    # x, w1, w2 arrive pre-cast to bf16 (MXU operands); accumulate in f32.
    h = jnp.dot(x_ref[...], w1_ref[...],
                preferred_element_type=jnp.float32)             # [TB, H_p] f32
    h = jnp.maximum(h + b1_ref[...], 0.0)                       # bias + ReLU in f32
    # Dropout: identity (eval mode).
    z = jnp.dot(h.astype(jnp.bfloat16), w2_ref[...],
                preferred_element_type=jnp.float32)             # [TB, D_out_p] f32
    z = z + b2_ref[...]
    # Sigmoid: exp and approx reciprocal both land on the (otherwise idle) EUP slot.
    o_ref[...] = pl.reciprocal(1.0 + jnp.exp(-z), approx=True).astype(o_ref.dtype)


def prepare_params(w1, b1, w2, b2):
    """One-time parameter prep: lane-pad to multiples of 128, pre-cast weights to bf16.

    Padding is numerically exact: padded weight rows/cols and bias entries are zero,
    so the real output columns are unchanged.
    """
    d_in, hid = w1.shape
    d_out = w2.shape[1]
    dp_in = _round_up(d_in, LANE)
    hp = _round_up(hid, LANE)
    dp_out = _round_up(d_out, LANE)

    w1p = jnp.zeros((dp_in, hp), jnp.bfloat16).at[:d_in, :hid].set(
        w1.astype(jnp.bfloat16))
    b1p = jnp.zeros((1, hp), jnp.float32).at[:, :hid].set(b1.astype(jnp.float32))
    w2p = jnp.zeros((hp, dp_out), jnp.bfloat16).at[:hid, :d_out].set(
        w2.astype(jnp.bfloat16))
    b2p = jnp.zeros((1, dp_out), jnp.float32).at[:, :d_out].set(b2.astype(jnp.float32))
    return (w1p, b1p, w2p, b2p, int(d_out))


@functools.partial(jax.jit, static_argnames=("d_out", "tb"))
def _forward_impl(x, w1p, b1p, w2p, b2p, *, d_out, tb):
    B, d_in = x.shape
    dp_in, hp = w1p.shape
    dp_out = w2p.shape[1]
    bp = _round_up(B, tb)

    # Fused pad + bf16 cast of the activations (single XLA op under this jit).
    xp = jnp.zeros((bp, dp_in), jnp.bfloat16).at[:B, :d_in].set(
        x.astype(jnp.bfloat16))

    grid = (bp // tb,)

    out_padded = pl.pallas_call(
        _mlp_kernel,
        out_shape=jax.ShapeDtypeStruct((bp, dp_out), jnp.bfloat16),
        grid_spec=pltpu.PrefetchScalarGridSpec(
            num_scalar_prefetch=0,
            grid=grid,
            in_specs=[
                # x: one batch tile per grid step.
                pl.BlockSpec((tb, dp_in), lambda i: (i, 0)),
                # Weights / biases: VMEM-resident across all grid steps.
                pl.BlockSpec((dp_in, hp), lambda i: (0, 0)),
                pl.BlockSpec((1, hp), lambda i: (0, 0)),
                pl.BlockSpec((hp, dp_out), lambda i: (0, 0)),
                pl.BlockSpec((1, dp_out), lambda i: (0, 0)),
            ],
            out_specs=pl.BlockSpec((tb, dp_out), lambda i: (i, 0)),
        ),
        compiler_params=pltpu.CompilerParams(
            # Batch axis is independent -> megacore sharding on v7x, harmless elsewhere.
            dimension_semantics=("parallel",),
        ),
    )(xp, w1p, b1p, w2p, b2p)

    # Strip batch/feature padding; cast back to f32 (fuses with the slice under jit).
    return out_padded[:B, :d_out].astype(jnp.float32)


def simple_nn_forward(x, params):
    """x: [B, D_in] f32; params: output of prepare_params()."""
    w1p, b1p, w2p, b2p, d_out = params
    tb = _pick_tile(x.shape[0], _num_tensorcores())
    return _forward_impl(x, w1p, b1p, w2p, b2p, d_out=d_out, tb=tb)


def reference_forward(x, w1, b1, w2, b2):
    h = jnp.maximum(x @ w1 + b1, 0.0)
    return jax.nn.sigmoid(h @ w2 + b2)


if __name__ == "__main__":
    # Shapes implied by SimpleNN(input_dim, hidden_dim, output_dim): small synthetic
    # sizes; batch chosen so v7x gets one 128-row tile per TensorCore.
    B, D_IN, HID, D_OUT = 256, 64, 32, 16

    key = jax.random.PRNGKey(0)
    k_x, k_w1, k_b1, k_w2, k_b2 = jax.random.split(key, 5)

    x = jax.random.normal(k_x, (B, D_IN), dtype=jnp.float32)
    # Deterministic parameter init (uniform, roughly matching nn.Linear's scale).
    w1 = jax.random.uniform(k_w1, (D_IN, HID), jnp.float32, -1.0, 1.0) / jnp.sqrt(D_IN)
    b1 = jax.random.uniform(k_b1, (1, HID), jnp.float32, -1.0, 1.0) / jnp.sqrt(D_IN)
    w2 = jax.random.uniform(k_w2, (HID, D_OUT), jnp.float32, -1.0, 1.0) / jnp.sqrt(HID)
    b2 = jax.random.uniform(k_b2, (1, D_OUT), jnp.float32, -1.0, 1.0) / jnp.sqrt(HID)

    # One-time parameter prep (hoisted out of the per-call path).
    params = jax.tree_util.tree_map(
        lambda p: jax.block_until_ready(p) if isinstance(p, jax.Array) else p,
        prepare_params(w1, b1, w2, b2))

    out = jax.block_until_ready(simple_nn_forward(x, params))

    ref = reference_forward(x, w1, b1, w2, b2)
    assert out.shape == (B, D_OUT), out.shape
    # Looser tolerance: bf16 MXU operands, bf16 output store and approx reciprocal vs
    # f32 reference; sigmoid output is in [0, 1] so absolute tolerance is meaningful.
    assert jnp.allclose(out, ref, atol=2e-2, rtol=0.0), (
        f"mismatch vs reference, max abs err = {jnp.max(jnp.abs(out - ref))}")

    print("KERNEL_OK")
</pallas_src>

<mosaic_0001>
module attributes {stable_mosaic.version = 11 : i64} {
  func.func @_mlp_kernel(%arg0: i32, %arg1: memref<256x128xbf16, #tpu.memory_space<vmem>>, %arg2: memref<128x128xbf16, #tpu.memory_space<vmem>>, %arg3: memref<1x128xf32, #tpu.memory_space<vmem>>, %arg4: memref<128x128xbf16, #tpu.memory_space<vmem>>, %arg5: memref<1x128xf32, #tpu.memory_space<vmem>>, %arg6: memref<256x128xbf16, #tpu.memory_space<vmem>>) attributes {dimension_semantics = [#tpu.dimension_semantics<parallel>], iteration_bounds = array<i64: 1>, scalar_prefetch = 0 : i64, scratch_operands = 0 : i64, tpu.core_type = #tpu.core_type<tc>, window_params = [{transform_indices = @transform_0, window_bounds = array<i64: 256, 128>}, {pipeline_mode = #tpu.pipeline_mode<synchronous>, transform_indices = @transform_1, window_bounds = array<i64: 128, 128>}, {pipeline_mode = #tpu.pipeline_mode<synchronous>, transform_indices = @transform_2, window_bounds = array<i64: 1, 128>}, {pipeline_mode = #tpu.pipeline_mode<synchronous>, transform_indices = @transform_3, window_bounds = array<i64: 128, 128>}, {pipeline_mode = #tpu.pipeline_mode<synchronous>, transform_indices = @transform_4, window_bounds = array<i64: 1, 128>}, {transform_indices = @transform_5, window_bounds = array<i64: 256, 128>}]} {
    %c0 = arith.constant 0 : index
    %c0_0 = arith.constant 0 : index
    %0 = vector.load %arg1[%c0, %c0_0] : memref<256x128xbf16, #tpu.memory_space<vmem>>, vector<256x128xbf16>
    %c0_1 = arith.constant 0 : index
    %c0_2 = arith.constant 0 : index
    %1 = vector.load %arg2[%c0_1, %c0_2] : memref<128x128xbf16, #tpu.memory_space<vmem>>, vector<128x128xbf16>
    %cst = arith.constant dense<0.000000e+00> : vector<256x128xf32>
    %2 = tpu.matmul %0, %1, %cst {dimension_numbers = #tpu.dot_dimension_numbers<[1], [0], [0], [1], [0, 0, 1, 1], [], []>} : vector<256x128xbf16>, vector<128x128xbf16>, vector<256x128xf32> -> vector<256x128xf32>
    %c0_3 = arith.constant 0 : index
    %c0_4 = arith.constant 0 : index
    %3 = vector.load %arg3[%c0_3, %c0_4] : memref<1x128xf32, #tpu.memory_space<vmem>>, vector<1x128xf32>
    %4 = vector.broadcast %3 : vector<1x128xf32> to vector<256x128xf32>
    %5 = arith.addf %2, %4 : vector<256x128xf32>
    %cst_5 = arith.constant 0.000000e+00 : f32
    %6 = vector.broadcast %cst_5 : f32 to vector<256x128xf32>
    %7 = arith.maximumf %5, %6 : vector<256x128xf32>
    %8 = arith.truncf %7 : vector<256x128xf32> to vector<256x128xbf16>
    %c0_6 = arith.constant 0 : index
    %c0_7 = arith.constant 0 : index
    %9 = vector.load %arg4[%c0_6, %c0_7] : memref<128x128xbf16, #tpu.memory_space<vmem>>, vector<128x128xbf16>
    %cst_8 = arith.constant dense<0.000000e+00> : vector<256x128xf32>
    %10 = tpu.matmul %8, %9, %cst_8 {dimension_numbers = #tpu.dot_dimension_numbers<[1], [0], [0], [1], [0, 0, 1, 1], [], []>} : vector<256x128xbf16>, vector<128x128xbf16>, vector<256x128xf32> -> vector<256x128xf32>
    %c0_9 = arith.constant 0 : index
    %c0_10 = arith.constant 0 : index
    %11 = vector.load %arg5[%c0_9, %c0_10] : memref<1x128xf32, #tpu.memory_space<vmem>>, vector<1x128xf32>
    %12 = vector.broadcast %11 : vector<1x128xf32> to vector<256x128xf32>
    %13 = arith.addf %10, %12 : vector<256x128xf32>
    %cst_11 = arith.constant 0.000000e+00 : f32
    %14 = vector.broadcast %cst_11 : f32 to vector<256x128xf32>
    %15 = arith.subf %14, %13 : vector<256x128xf32>
    %16 = math.exp %15 : vector<256x128xf32>
    %cst_12 = arith.constant 1.000000e+00 : f32
    %17 = vector.broadcast %cst_12 : f32 to vector<256x128xf32>
    %18 = arith.addf %17, %16 : vector<256x128xf32>
    %19 = tpu.reciprocal %18 {approx = true} : vector<256x128xf32> -> vector<256x128xf32>
    %20 = arith.truncf %19 : vector<256x128xf32> to vector<256x128xbf16>
    %c0_13 = arith.constant 0 : index
    %c0_14 = arith.constant 0 : index
    %21 = vector.load %arg6[%c0_13, %c0_14] : memref<256x128xbf16, #tpu.memory_space<vmem>>, vector<256x128xbf16>
    tpu.vector_store %arg6[%c0_13, %c0_14], %20 {strides = array<i32>} : memref<256x128xbf16, #tpu.memory_space<vmem>>, vector<256x128xbf16>,
    return
  }
  func.func @transform_0(%arg0: i32) -> (i32, i32) {
    %c0_i32 = arith.constant 0 : i32
    %c0_i32_0 = arith.constant 0 : i32
    return %arg0, %c0_i32 : i32, i32
  }
  func.func @transform_1(%arg0: i32) -> (i32, i32) {
    %c0_i32 = arith.constant 0 : i32
    %c0_i32_0 = arith.constant 0 : i32
    %c0_i32_1 = arith.constant 0 : i32
    return %c0_i32, %c0_i32_0 : i32, i32
  }
  func.func @transform_2(%arg0: i32) -> (i32, i32) {
    %c0_i32 = arith.constant 0 : i32
    %c0_i32_0 = arith.constant 0 : i32
    %c0_i32_1 = arith.constant 0 : i32
    return %c0_i32, %c0_i32_0 : i32, i32
  }
  func.func @transform_3(%arg0: i32) -> (i32, i32) {
    %c0_i32 = arith.constant 0 : i32
    %c0_i32_0 = arith.constant 0 : i32
    %c0_i32_1 = arith.constant 0 : i32
    return %c0_i32, %c0_i32_0 : i32, i32
  }
  func.func @transform_4(%arg0: i32) -> (i32, i32) {
    %c0_i32 = arith.constant 0 : i32
    %c0_i32_0 = arith.constant 0 : i32
    %c0_i32_1 = arith.constant 0 : i32
    return %c0_i32, %c0_i32_0 : i32, i32
  }
  func.func @transform_5(%arg0: i32) -> (i32, i32) {
    %c0_i32 = arith.constant 0 : i32
    %c0_i32_0 = arith.constant 0 : i32
    return %arg0, %c0_i32 : i32, i32
  }
}

</mosaic_0001>

<bundles_post_ra>
// kernel: _forward_impl.1
= control target key start
LH: loop header
LB: loop body
LE: loop exit
PB: predicated region body
PF: predicated region fallthrough
CT: control target
= control target key end

     0   :  { %s1730_s1 = inlined_call_operand.vmem [shape: bf16[128,128], index: 1, kind: input, shape index: {}]   ;;  %s1731_s0 = inlined_call_operand.vmem [shape: bf16[256,128], index: 0, kind: input, shape index: {}]   ;;  %s1732_s3 = inlined_call_operand.vmem [shape: bf16[128,128], index: 3, kind: input, shape index: {}]   ;;  %s1733_s2 = inlined_call_operand.vmem [shape: f32[1,128], index: 2, kind: input, shape index: {}]   ;;  %s1734_s4 = inlined_call_operand.vmem [shape: f32[1,128], index: 4, kind: input, shape index: {}]   ;;  %s1735_s5 = inlined_call_operand.vmem [shape: bf16[256,128], index: 5, kind: output, shape index: {}]  }
   0x1   :  { %v1322_v0 = vld [vmem:[%s1730_s1] sm:$0xff]   ;;  %v1323_v1 = vld [vmem:[%s1730_s1 + $0x8] sm:$0xff]   ;;  %v1324_v2 = vld [vmem:[%s1730_s1 + $0x10] sm:$0xff]  }
   0x2   :  { %1226 = vmatprep.subr.bf16.mxu0 %v1322_v0  ;;  %v1325_v3 = vld [vmem:[%s1730_s1 + $0x18] sm:$0xff]   ;;  %v1330_v4 = vld [vmem:[%s1731_s0] sm:$0xff]   ;;  %v1327_v6 = vld [vmem:[%s1730_s1 + $0x28] sm:$0xff]  }
   0x3   :  { %1227 = vmatpush3.bf16.msra.mxu0 %v1322_v0  ;;  %1242 = vmatprep.mubr.bf16.mxu0 %v1330_v4  ;;  %v1326_v5 = vld [vmem:[%s1730_s1 + $0x20] sm:$0xff]   ;;  %v1328_v7 = vld [vmem:[%s1730_s1 + $0x30] sm:$0xff]   ;;  %v1329_v8 = vld [vmem:[%s1730_s1 + $0x38] sm:$0xff]  }
   0x4   :  { %1228 = vmatprep.subr.bf16.mxu0 %v1323_v1  ;;  %v1346_v9 = vld [vmem:[%s1732_s3] sm:$0xff]   ;;  %v1347_v10 = vld [vmem:[%s1732_s3 + $0x8] sm:$0xff]   ;;  %v1348_v11 = vld [vmem:[%s1732_s3 + $0x10] sm:$0xff]  }
   0x5   :  { %1274 = vmatprep.subr.bf16.mxu1 %v1346_v9  ;;  %v1331_v12 = vld [vmem:[%s1731_s0 + $0x8] sm:$0xff]   ;;  %v1332_v13 = vld [vmem:[%s1731_s0 + $0x10] sm:$0xff]   ;;  %v1349_v14 = vld [vmem:[%s1732_s3 + $0x18] sm:$0xff]  }
   0x6   :  { %1275 = vmatpush3.bf16.msra.mxu1 %v1346_v9  ;;  %v1350_v15 = vld [vmem:[%s1732_s3 + $0x20] sm:$0xff]   ;;  %v1333_v16 = vld [vmem:[%s1731_s0 + $0x18] sm:$0xff]   ;;  %v1351_v18 = vld [vmem:[%s1732_s3 + $0x28] sm:$0xff]  }
   0x7   :  { %1229 = vmatpush3.bf16.msra.mxu0 %v1323_v1  ;;  %1276 = vmatprep.subr.bf16.mxu1 %v1347_v10  ;;  %v1334_v17 = vld [vmem:[%s1731_s0 + $0x20] sm:$0xff]   ;;  %v1335_v19 = vld [vmem:[%s1731_s0 + $0x28] sm:$0xff]   ;;  %v1336_v20 = vld [vmem:[%s1731_s0 + $0x30] sm:$0xff]  }
   0x8   :  { %1230 = vmatprep.subr.bf16.mxu0 %v1324_v2  ;;  %v1337_v21 = vld [vmem:[%s1731_s0 + $0x38] sm:$0xff]   ;;  %v1338_v22 = vld [vmem:[%s1731_s0 + $0x40] sm:$0xff]   ;;  %v1339_v23 = vld [vmem:[%s1731_s0 + $0x48] sm:$0xff]  }
   0x9   :  { %v1340_v24 = vld [vmem:[%s1731_s0 + $0x50] sm:$0xff]   ;;  %v1341_v25 = vld [vmem:[%s1731_s0 + $0x58] sm:$0xff]   ;;  %v1342_v26 = vld [vmem:[%s1731_s0 + $0x60] sm:$0xff]  }
   0xa   :  { %1277 = vmatpush3.bf16.msra.mxu1 %v1347_v10  ;;  %v1343_v27 = vld [vmem:[%s1731_s0 + $0x68] sm:$0xff]   ;;  %v1344_v28 = vld [vmem:[%s1731_s0 + $0x70] sm:$0xff]   ;;  %v1345_v29 = vld [vmem:[%s1731_s0 + $0x78] sm:$0xff]  }
   0xb   :  { %1231 = vmatpush3.bf16.msra.mxu0 %v1324_v2  ;;  %1278 = vmatprep.subr.bf16.mxu1 %v1348_v11  ;;  %v1352_v30 = vld [vmem:[%s1732_s3 + $0x30] sm:$0xff]   ;;  %v1353_v31 = vld [vmem:[%s1732_s3 + $0x38] sm:$0xff]   ;;  %v1611_v32 = vld [vmem:[%s1733_s2] ss:$0 sm:$0xff] }
   0xc   :  { %1232 = vmatprep.subr.bf16.mxu0 %v1325_v3 }
   0xe   :  { %1279 = vmatpush3.bf16.msra.mxu1 %v1348_v11 }
   0xf   :  { %1233 = vmatpush3.bf16.msra.mxu0 %v1325_v3  ;;  %1280 = vmatprep.subr.bf16.mxu1 %v1349_v14 }
  0x10   :  { %1234 = vmatprep.subr.bf16.mxu0 %v1326_v5 }
  0x12   :  { %1281 = vmatpush3.bf16.msra.mxu1 %v1349_v14 }
  0x13   :  { %1235 = vmatpush3.bf16.msra.mxu0 %v1326_v5  ;;  %1282 = vmatprep.subr.bf16.mxu1 %v1350_v15 }
  0x14   :  { %1236 = vmatprep.subr.bf16.mxu0 %v1327_v6 }
  0x16   :  { %1283 = vmatpush3.bf16.msra.mxu1 %v1350_v15 }
  0x17   :  { %1237 = vmatpush3.bf16.msra.mxu0 %v1327_v6  ;;  %1284 = vmatprep.subr.bf16.mxu1 %v1351_v18 }
  0x18   :  { %1238 = vmatprep.subr.bf16.mxu0 %v1328_v7 }
  0x1a   :  { %1285 = vmatpush3.bf16.msra.mxu1 %v1351_v18 }
  0x1b   :  { %1239 = vmatpush3.bf16.msra.mxu0 %v1328_v7  ;;  %1286 = vmatprep.subr.bf16.mxu1 %v1352_v30 }
  0x1c   :  { %1240 = vmatprep.subr.bf16.mxu0 %v1329_v8 }
  0x1e   :  { %1287 = vmatpush3.bf16.msra.mxu1 %v1352_v30 }
  0x1f   :  { %1241 = vmatpush3.bf16.msra.mxu0 %v1329_v8  ;;  %1288 = vmatprep.subr.bf16.mxu1 %v1353_v31 }
  0x22   :  { %1243 = vmatmul.mubr.bf16.vlgmr.msra.gmra.mrb[0].mxu0 %v1331_v12  ;;  %1289 = vmatpush3.bf16.msra.mxu1 %v1353_v31 }
  0x23   :  { %1246 = vmatprep.mubr.bf16.mxu0 %v1332_v13 }
  0x2a   :  { %1247 = vmatmul.mubr.bf16.gmra.mrb[4].mxu0 %v1333_v16 }
  0x2b   :  { %1250 = vmatprep.mubr.bf16.mxu0 %v1334_v17 }
  0x32   :  { %1251 = vmatmul.mubr.bf16.gmra.mrb[8].mxu0 %v1335_v19 }
  0x33   :  { %1254 = vmatprep.mubr.bf16.mxu0 %v1336_v20 }
  0x3a   :  { %1255 = vmatmul.mubr.bf16.gmra.mrb[12].mxu0 %v1337_v21 }
  0x3b   :  { %1258 = vmatprep.mubr.bf16.mxu0 %v1338_v22 }
  0x42   :  { %1259 = vmatmul.mubr.bf16.gmra.mrb[16].mxu0 %v1339_v23 }
  0x43   :  { %1262 = vmatprep.mubr.bf16.mxu0 %v1340_v24 }
  0x4a   :  { %1263 = vmatmul.mubr.bf16.gmra.mrb[20].mxu0 %v1341_v25 }
  0x4b   :  { %1266 = vmatprep.mubr.bf16.mxu0 %v1342_v26 }
  0x52   :  { %1267 = vmatmul.mubr.bf16.gmra.mrb[24].mxu0 %v1343_v27 }
  0x53   :  { %1270 = vmatprep.mubr.bf16.mxu0 %v1344_v28 }
  0x5a   :  { %1271 = vmatmul.mubr.bf16.gmra.mrb[28].mxu0 %v1345_v29 }
  0xf5   :  { %v1244_v33 = vpop.f32.mrb[0].mxu0 }
  0xf6   :  { %v263_v34 = vadd.f32 %v1244_v33, %v1611_v32  ;;  %v254_v35 = vpop.f32.mrb[1].mxu0 }
  0xf7   :  { %v255_v36 = vadd.f32 %v1611_v32, %v254_v35  ;;  %v1245_v37 = vpop.f32.mrb[2].mxu0 }
  0xf8   :  { %v266_v38 = vadd.f32 %v1245_v37, %v1611_v32  ;;  %v257_v39 = vpop.f32.mrb[3].mxu0  ;;  %v383_v41 = vmax.f32 %v263_v34, 0.0 }
  0xf9   :  { %v258_v40 = vadd.f32 %v1611_v32, %v257_v39  ;;  %v381_v43 = vmax.f32 %v255_v36, 0.0 }
  0xfa   :  { %v384_v42 = vmax.f32 %v266_v38, 0.0 }
  0xfb   :  { %v382_v44 = vmax.f32 %v258_v40, 0.0 }
  0xfc   :  { %v414_v45 = vpack.c.bf16 %v384_v42, %v383_v41 }
  0xfd   :  { %v1248_v46 = vpop.f32.mrb[4].mxu0  ;;  %v413_v47 = vpack.c.bf16 %v382_v44, %v381_v43 }
  0xfe   :  { %v279_v48 = vadd.f32 %v1248_v46, %v1611_v32  ;;  %v270_v49 = vpop.f32.mrb[5].mxu0 }
  0xff   :  { %v271_v50 = vadd.f32 %v1611_v32, %v270_v49  ;;  %v1249_v51 = vpop.f32.mrb[6].mxu0  ;;  %1290 = vmatprep.mubr.bf16.mxu1 %v413_v47 }
 0x100   :  { %v282_v52 = vadd.f32 %v1249_v51, %v1611_v32  ;;  %v273_v53 = vpop.f32.mrb[7].mxu0  ;;  %1291 = vmatmul.mubr.bf16.vlgmr.msra.gmra.mrb[0].mxu1 %v414_v45  ;;  %v387_v55 = vmax.f32 %v279_v48, 0.0 }
 0x101   :  { %v274_v54 = vadd.f32 %v1611_v32, %v273_v53  ;;  %v385_v57 = vmax.f32 %v271_v50, 0.0 }
 0x102   :  { %v388_v56 = vmax.f32 %v282_v52, 0.0 }
 0x103   :  { %v386_v58 = vmax.f32 %v274_v54, 0.0 }
 0x104   :  { %v416_v59 = vpack.c.bf16 %v388_v56, %v387_v55 }
 0x105   :  { %v415_v60 = vpack.c.bf16 %v386_v58, %v385_v57  ;;  %v1252_v61 = vpop.f32.mrb[8].mxu0 }
 0x106   :  { %v295_v62 = vadd.f32 %v1252_v61, %v1611_v32  ;;  %v286_v63 = vpop.f32.mrb[9].mxu0 }
 0x107   :  { %v287_v0 = vadd.f32 %v1611_v32, %v286_v63  ;;  %v1253_v1 = vpop.f32.mrb[10].mxu0  ;;  %1294 = vmatprep.mubr.bf16.mxu1 %v415_v60 }
 0x108   :  { %v298_v2 = vadd.f32 %v1253_v1, %v1611_v32  ;;  %v289_v3 = vpop.f32.mrb[11].mxu0  ;;  %1295 = vmatmul.mubr.bf16.gmra.mrb[4].mxu1 %v416_v59  ;;  %v391_v5 = vmax.f32 %v295_v62, 0.0 }
 0x109   :  { %v290_v4 = vadd.f32 %v1611_v32, %v289_v3  ;;  %v389_v7 = vmax.f32 %v287_v0, 0.0 }
 0x10a   :  { %v392_v6 = vmax.f32 %v298_v2, 0.0 }
 0x10b   :  { %v390_v8 = vmax.f32 %v290_v4, 0.0 }
 0x10c   :  { %v418_v9 = vpack.c.bf16 %v392_v6, %v391_v5 }
 0x10d   :  { %v417_v10 = vpack.c.bf16 %v390_v8, %v389_v7  ;;  %v1256_v11 = vpop.f32.mrb[12].mxu0 }
 0x10e   :  { %v311_v12 = vadd.f32 %v1256_v11, %v1611_v32  ;;  %v302_v13 = vpop.f32.mrb[13].mxu0 }
 0x10f   :  { %v303_v14 = vadd.f32 %v1611_v32, %v302_v13  ;;  %v1257_v15 = vpop.f32.mrb[14].mxu0  ;;  %1298 = vmatprep.mubr.bf16.mxu1 %v417_v10 }
 0x110   :  { %v314_v16 = vadd.f32 %v1257_v15, %v1611_v32  ;;  %v305_v17 = vpop.f32.mrb[15].mxu0  ;;  %1299 = vmatmul.mubr.bf16.gmra.mrb[8].mxu1 %v418_v9  ;;  %v395_v19 = vmax.f32 %v311_v12, 0.0 }
 0x111   :  { %v306_v18 = vadd.f32 %v1611_v32, %v305_v17  ;;  %v393_v21 = vmax.f32 %v303_v14, 0.0 }
 0x112   :  { %v396_v20 = vmax.f32 %v314_v16, 0.0 }
 0x113   :  { %v394_v22 = vmax.f32 %v306_v18, 0.0  ;;  %v1648_v18 = vld [vmem:[%s1734_s4] ss:$0 sm:$0xff] }
 0x114   :  { %v420_v23 = vpack.c.bf16 %v396_v20, %v395_v19 }
 0x115   :  { %v419_v24 = vpack.c.bf16 %v394_v22, %v393_v21  ;;  %v1260_v25 = vpop.f32.mrb[16].mxu0 }
 0x116   :  { %v327_v26 = vadd.f32 %v1260_v25, %v1611_v32  ;;  %v318_v27 = vpop.f32.mrb[17].mxu0 }
 0x117   :  { %v319_v28 = vadd.f32 %v1611_v32, %v318_v27  ;;  %v1261_v29 = vpop.f32.mrb[18].mxu0  ;;  %1302 = vmatprep.mubr.bf16.mxu1 %v419_v24 }
 0x118   :  { %v330_v30 = vadd.f32 %v1261_v29, %v1611_v32  ;;  %v321_v31 = vpop.f32.mrb[19].mxu0  ;;  %1303 = vmatmul.mubr.bf16.gmra.mrb[12].mxu1 %v420_v23  ;;  %v399_v34 = vmax.f32 %v327_v26, 0.0 }
 0x119   :  { %v322_v33 = vadd.f32 %v1611_v32, %v321_v31  ;;  %v397_v36 = vmax.f32 %v319_v28, 0.0 }
 0x11a   :  { %v400_v35 = vmax.f32 %v330_v30, 0.0 }
 0x11b   :  { %v398_v37 = vmax.f32 %v322_v33, 0.0 }
 0x11c   :  { %v422_v38 = vpack.c.bf16 %v400_v35, %v399_v34 }
 0x11d   :  { %v421_v39 = vpack.c.bf16 %v398_v37, %v397_v36  ;;  %v1264_v40 = vpop.f32.mrb[20].mxu0 }
 0x11e   :  { %v343_v41 = vadd.f32 %v1264_v40, %v1611_v32  ;;  %v334_v42 = vpop.f32.mrb[21].mxu0 }
 0x11f   :  { %v335_v43 = vadd.f32 %v1611_v32, %v334_v42  ;;  %v1265_v44 = vpop.f32.mrb[22].mxu0  ;;  %1306 = vmatprep.mubr.bf16.mxu1 %v421_v39 }
 0x120   :  { %v346_v45 = vadd.f32 %v1265_v44, %v1611_v32  ;;  %v337_v46 = vpop.f32.mrb[23].mxu0  ;;  %1307 = vmatmul.mubr.bf16.gmra.mrb[16].mxu1 %v422_v38  ;;  %v403_v48 = vmax.f32 %v343_v41, 0.0 }
 0x121   :  { %v338_v47 = vadd.f32 %v1611_v32, %v337_v46  ;;  %v401_v50 = vmax.f32 %v335_v43, 0.0 }
 0x122   :  { %v404_v49 = vmax.f32 %v346_v45, 0.0 }
 0x123   :  { %v402_v51 = vmax.f32 %v338_v47, 0.0 }
 0x124   :  { %v424_v52 = vpack.c.bf16 %v404_v49, %v403_v48 }
 0x125   :  { %v423_v53 = vpack.c.bf16 %v402_v51, %v401_v50  ;;  %v1268_v54 = vpop.f32.mrb[24].mxu0 }
 0x126   :  { %v359_v55 = vadd.f32 %v1268_v54, %v1611_v32  ;;  %v350_v56 = vpop.f32.mrb[25].mxu0 }
 0x127   :  { %v351_v57 = vadd.f32 %v1611_v32, %v350_v56  ;;  %v1269_v58 = vpop.f32.mrb[26].mxu0  ;;  %1310 = vmatprep.mubr.bf16.mxu1 %v423_v53 }
 0x128   :  { %v362_v59 = vadd.f32 %v1269_v58, %v1611_v32  ;;  %v353_v60 = vpop.f32.mrb[27].mxu0  ;;  %1311 = vmatmul.mubr.bf16.gmra.mrb[20].mxu1 %v424_v52  ;;  %v407_v62 = vmax.f32 %v359_v55, 0.0 }
 0x129   :  { %v354_v61 = vadd.f32 %v1611_v32, %v353_v60  ;;  %v405_v0 = vmax.f32 %v351_v57, 0.0 }
 0x12a   :  { %v408_v63 = vmax.f32 %v362_v59, 0.0 }
 0x12b   :  { %v406_v1 = vmax.f32 %v354_v61, 0.0 }
 0x12c   :  { %v426_v2 = vpack.c.bf16 %v408_v63, %v407_v62 }
 0x12d   :  { %v425_v3 = vpack.c.bf16 %v406_v1, %v405_v0  ;;  %v1272_v4 = vpop.f32.mrb[28].mxu0 }
 0x12e   :  { %v375_v5 = vadd.f32 %v1272_v4, %v1611_v32  ;;  %v366_v6 = vpop.f32.mrb[29].mxu0 }
 0x12f   :  { %v367_v7 = vadd.f32 %v1611_v32, %v366_v6  ;;  %v1273_v8 = vpop.f32.mrb[30].mxu0  ;;  %1314 = vmatprep.mubr.bf16.mxu1 %v425_v3 }
 0x130   :  { %v378_v9 = vadd.f32 %v1273_v8, %v1611_v32  ;;  %v369_v10 = vpop.f32.mrb[31].mxu0  ;;  %1315 = vmatmul.mubr.bf16.gmra.mrb[24].mxu1 %v426_v2  ;;  %v411_v12 = vmax.f32 %v375_v5, 0.0 }
 0x131   :  { %v370_v11 = vadd.f32 %v1611_v32, %v369_v10  ;;  %v409_v14 = vmax.f32 %v367_v7, 0.0 }
 0x132   :  { %v412_v13 = vmax.f32 %v378_v9, 0.0 }
 0x133   :  { %v410_v15 = vmax.f32 %v370_v11, 0.0 }
 0x134   :  { %v428_v16 = vpack.c.bf16 %v412_v13, %v411_v12 }
 0x135   :  { %v427_v17 = vpack.c.bf16 %v410_v15, %v409_v14 }
 0x137   :  { %1318 = vmatprep.mubr.bf16.mxu1 %v427_v17 }
 0x138   :  { %1319 = vmatmul.mubr.bf16.gmra.mrb[28].mxu1 %v428_v16 }
 0x1d3   :  { %v1292_v19 = vpop.f32.mrb[0].mxu1 }
 0x1d4   :  { %v543_v20 = vadd.f32 %v1292_v19, %v1648_v18  ;;  %v534_v21 = vpop.f32.mrb[1].mxu1 }
 0x1d5   :  { %v535_v22 = vadd.f32 %v1648_v18, %v534_v21  ;;  %v1293_v32 = vpop.f32.mrb[2].mxu1 }
 0x1d6   :  { %v663_v23 = vsub.f32 0.0, %v543_v20  ;;  %v546_v24 = vadd.f32 %v1293_v32, %v1648_v18  ;;  %v537_v25 = vpop.f32.mrb[3].mxu1 }
 0x1d7   :  { %v661_v26 = vsub.f32 0.0, %v535_v22  ;;  %v538_v27 = vadd.f32 %v1648_v18, %v537_v25 }
 0x1d8   :  { %v697_v28 = vmul.f32 1.442695, %v663_v23  ;;  %v664_v29 = vsub.f32 0.0, %v546_v24 }
 0x1d9   :  { %v693_v30 = vmul.f32 1.442695, %v661_v26  ;;  %v662_v31 = vsub.f32 0.0, %v538_v27 }
 0x1da   :  { %1354 = vpow2.f32 %v697_v28  ;;  %v699_v33 = vmul.f32 1.442695, %v664_v29 }
 0x1db   :  { %1356 = vpow2.f32 %v693_v30  ;;  %v695_v34 = vmul.f32 1.442695, %v662_v31  ;;  %v1296_v35 = vpop.f32.mrb[4].mxu1 }
 0x1dc   :  { %1358 = vpow2.f32 %v699_v33  ;;  %v559_v36 = vadd.f32 %v1296_v35, %v1648_v18  ;;  %v550_v37 = vpop.f32.mrb[5].mxu1 }
 0x1dd   :  { %1360 = vpow2.f32 %v695_v34  ;;  %v551_v38 = vadd.f32 %v1648_v18, %v550_v37  ;;  %v1297_v39 = vpop.f32.mrb[6].mxu1 }
 0x1de   :  { %v667_v40 = vsub.f32 0.0, %v559_v36  ;;  %v562_v41 = vadd.f32 %v1297_v39, %v1648_v18  ;;  %v553_v42 = vpop.f32.mrb[7].mxu1 }
 0x1df   :  { %v665_v43 = vsub.f32 0.0, %v551_v38  ;;  %v554_v44 = vadd.f32 %v1648_v18, %v553_v42 }
 0x1e0   :  { %v705_v45 = vmul.f32 1.442695, %v667_v40  ;;  %v668_v46 = vsub.f32 0.0, %v562_v41 }
 0x1e1   :  { %v701_v47 = vmul.f32 1.442695, %v665_v43  ;;  %v666_v48 = vsub.f32 0.0, %v554_v44 }
 0x1e2   :  { %1362 = vpow2.f32 %v705_v45  ;;  %v707_v49 = vmul.f32 1.442695, %v668_v46 }
 0x1e3   :  { %1364 = vpow2.f32 %v701_v47  ;;  %v703_v50 = vmul.f32 1.442695, %v666_v48  ;;  %v1300_v51 = vpop.f32.mrb[8].mxu1 }
 0x1e4   :  { %v1355_v52 = vpop.eup %1354  ;;  %1366 = vpow2.f32 %v707_v49  ;;  %v575_v53 = vadd.f32 %v1300_v51, %v1648_v18  ;;  %v566_v54 = vpop.f32.mrb[9].mxu1 }
 0x1e5   :  { %v1357_v55 = vpop.eup %1356  ;;  %v759_v56 = vadd.f32 1.0, %v1355_v52  ;;  %1368 = vpow2.f32 %v703_v50  ;;  %v567_v57 = vadd.f32 %v1648_v18, %v566_v54  ;;  %v1301_v58 = vpop.f32.mrb[10].mxu1 }
 0x1e6   :  { %v1359_v59 = vpop.eup %1358  ;;  %v757_v60 = vadd.f32 1.0, %v1357_v55  ;;  %v671_v61 = vsub.f32 0.0, %v575_v53  ;;  %v578_v62 = vadd.f32 %v1301_v58, %v1648_v18  ;;  %v569_v63 = vpop.f32.mrb[11].mxu1 }
 0x1e7   :  { %v1361_v0 = vpop.eup %1360  ;;  %1370 = vrcp.f32 %v759_v56  ;;  %v760_v1 = vadd.f32 1.0, %v1359_v59  ;;  %v669_v2 = vsub.f32 0.0, %v567_v57  ;;  %v570_v3 = vadd.f32 %v1648_v18, %v569_v63 }
 0x1e8   :  { %1372 = vrcp.f32 %v757_v60  ;;  %v758_v4 = vadd.f32 1.0, %v1361_v0  ;;  %v713_v5 = vmul.f32 1.442695, %v671_v61  ;;  %v672_v6 = vsub.f32 0.0, %v578_v62 }
 0x1e9   :  { %1374 = vrcp.f32 %v760_v1  ;;  %v709_v7 = vmul.f32 1.442695, %v669_v2  ;;  %v670_v8 = vsub.f32 0.0, %v570_v3 }
 0x1ea   :  { %1376 = vrcp.f32 %v758_v4  ;;  %v715_v9 = vmul.f32 1.442695, %v672_v6 }
 0x1eb   :  { %1378 = vpow2.f32 %v713_v5  ;;  %v711_v10 = vmul.f32 1.442695, %v670_v8  ;;  %v1304_v11 = vpop.f32.mrb[12].mxu1 }
 0x1ec   :  { %v1363_v12 = vpop.eup %1362  ;;  %1380 = vpow2.f32 %v709_v7  ;;  %v591_v13 = vadd.f32 %v1304_v11, %v1648_v18  ;;  %v582_v14 = vpop.f32.mrb[13].mxu1 }
 0x1ed   :  { %v1365_v15 = vpop.eup %1364  ;;  %v763_v16 = vadd.f32 1.0, %v1363_v12  ;;  %1382 = vpow2.f32 %v715_v9  ;;  %v583_v17 = vadd.f32 %v1648_v18, %v582_v14  ;;  %v1305_v19 = vpop.f32.mrb[14].mxu1 }
 0x1ee   :  { %v1367_v20 = vpop.eup %1366  ;;  %v761_v21 = vadd.f32 1.0, %v1365_v15  ;;  %1384 = vpow2.f32 %v711_v10  ;;  %v675_v22 = vsub.f32 0.0, %v591_v13  ;;  %v594_v32 = vadd.f32 %v1305_v19, %v1648_v18  ;;  %v585_v23 = vpop.f32.mrb[15].mxu1 }
 0x1ef   :  { %v1369_v24 = vpop.eup %1368  ;;  %1386 = vrcp.f32 %v763_v16  ;;  %v764_v25 = vadd.f32 1.0, %v1367_v20  ;;  %v673_v26 = vsub.f32 0.0, %v583_v17  ;;  %v586_v27 = vadd.f32 %v1648_v18, %v585_v23 }
 0x1f0   :  { %1388 = vrcp.f32 %v761_v21  ;;  %v762_v28 = vadd.f32 1.0, %v1369_v24  ;;  %v721_v29 = vmul.f32 1.442695, %v675_v22  ;;  %v676_v30 = vsub.f32 0.0, %v594_v32 }
 0x1f1   :  { %v1371_v31 = vpop.eup %1370  ;;  %1390 = vrcp.f32 %v764_v25  ;;  %v717_v33 = vmul.f32 1.442695, %v673_v26  ;;  %v674_v34 = vsub.f32 0.0, %v586_v27 }
 0x1f2   :  { %v1373_v35 = vpop.eup %1372  ;;  %1392 = vrcp.f32 %v762_v28  ;;  %v723_v36 = vmul.f32 1.442695, %v676_v30 }
 0x1f3   :  { %v1375_v37 = vpop.eup %1374  ;;  %1394 = vpow2.f32 %v721_v29  ;;  %v719_v38 = vmul.f32 1.442695, %v674_v34  ;;  %v1308_v39 = vpop.f32.mrb[16].mxu1 }
 0x1f4   :  { %v1377_v40 = vpop.eup %1376  ;;  %v1091_v41 = vpack.c.bf16 %v1375_v37, %v1371_v31  ;;  %1396 = vpow2.f32 %v717_v33  ;;  %v607_v42 = vadd.f32 %v1308_v39, %v1648_v18  ;;  %v598_v43 = vpop.f32.mrb[17].mxu1 }
 0x1f5   :  { %v1379_v44 = vpop.eup %1378  ;;  %v1086_v45 = vpack.c.bf16 %v1377_v40, %v1373_v35  ;;  %1398 = vpow2.f32 %v723_v36  ;;  %v599_v46 = vadd.f32 %v1648_v18, %v598_v43  ;;  %v1309_v47 = vpop.f32.mrb[18].mxu1 }
 0x1f6   :  { %v1381_v48 = vpop.eup %1380  ;;  %1163 = vst [vmem:[%s1735_s5 + $0x8] sm:$0xff] %v1091_v41   ;;  %v767_v49 = vadd.f32 1.0, %v1379_v44  ;;  %1400 = vpow2.f32 %v719_v38  ;;  %v679_v50 = vsub.f32 0.0, %v607_v42  ;;  %v610_v51 = vadd.f32 %v1309_v47, %v1648_v18  ;;  %v601_v52 = vpop.f32.mrb[19].mxu1 }
 0x1f7   :  { %v1383_v53 = vpop.eup %1382  ;;  %1087 = vst [vmem:[%s1735_s5] sm:$0xff] %v1086_v45   ;;  %v765_v54 = vadd.f32 1.0, %v1381_v48  ;;  %v677_v55 = vsub.f32 0.0, %v599_v46  ;;  %v602_v56 = vadd.f32 %v1648_v18, %v601_v52 }
 0x1f8   :  { %v1385_v57 = vpop.eup %1384  ;;  %1402 = vrcp.f32 %v767_v49  ;;  %v768_v58 = vadd.f32 1.0, %v1383_v53  ;;  %v729_v59 = vmul.f32 1.442695, %v679_v50  ;;  %v680_v60 = vsub.f32 0.0, %v610_v51 }
 0x1f9   :  { %v1387_v61 = vpop.eup %1386  ;;  %1404 = vrcp.f32 %v765_v54  ;;  %v766_v62 = vadd.f32 1.0, %v1385_v57  ;;  %v725_v63 = vmul.f32 1.442695, %v677_v55  ;;  %v678_v0 = vsub.f32 0.0, %v602_v56 }
 0x1fa   :  { %v1389_v1 = vpop.eup %1388  ;;  %1406 = vrcp.f32 %v768_v58  ;;  %v731_v2 = vmul.f32 1.442695, %v680_v60 }
 0x1fb   :  { %v1391_v3 = vpop.eup %1390  ;;  %1408 = vrcp.f32 %v766_v62  ;;  %v727_v4 = vmul.f32 1.442695, %v678_v0  ;;  %v1312_v5 = vpop.f32.mrb[20].mxu1 }
 0x1fc   :  { %v1393_v6 = vpop.eup %1392  ;;  %v1101_v7 = vpack.c.bf16 %v1391_v3, %v1387_v61  ;;  %1410 = vpow2.f32 %v729_v59  ;;  %v623_v8 = vadd.f32 %v1312_v5, %v1648_v18  ;;  %v614_v9 = vpop.f32.mrb[21].mxu1 }
 0x1fd   :  { %v1395_v10 = vpop.eup %1394  ;;  %v1096_v11 = vpack.c.bf16 %v1393_v6, %v1389_v1  ;;  %1412 = vpow2.f32 %v725_v63  ;;  %v615_v12 = vadd.f32 %v1648_v18, %v614_v9  ;;  %v1313_v13 = vpop.f32.mrb[22].mxu1 }
 0x1fe   :  { %v1397_v14 = vpop.eup %1396  ;;  %1165 = vst [vmem:[%s1735_s5 + $0x18] sm:$0xff] %v1101_v7   ;;  %v771_v15 = vadd.f32 1.0, %v1395_v10  ;;  %1414 = vpow2.f32 %v731_v2  ;;  %v683_v16 = vsub.f32 0.0, %v623_v8  ;;  %v626_v17 = vadd.f32 %v1313_v13, %v1648_v18  ;;  %v617_v19 = vpop.f32.mrb[23].mxu1 }
 0x1ff   :  { %v1399_v20 = vpop.eup %1398  ;;  %1164 = vst [vmem:[%s1735_s5 + $0x10] sm:$0xff] %v1096_v11   ;;  %v769_v21 = vadd.f32 1.0, %v1397_v14  ;;  %1416 = vpow2.f32 %v727_v4  ;;  %v681_v22 = vsub.f32 0.0, %v615_v12  ;;  %v618_v32 = vadd.f32 %v1648_v18, %v617_v19 }
 0x200   :  { %v1401_v23 = vpop.eup %1400  ;;  %1418 = vrcp.f32 %v771_v15  ;;  %v772_v24 = vadd.f32 1.0, %v1399_v20  ;;  %v737_v25 = vmul.f32 1.442695, %v683_v16  ;;  %v684_v26 = vsub.f32 0.0, %v626_v17 }
 0x201   :  { %1420 = vrcp.f32 %v769_v21  ;;  %v770_v27 = vadd.f32 1.0, %v1401_v23  ;;  %v733_v28 = vmul.f32 1.442695, %v681_v22  ;;  %v682_v29 = vsub.f32 0.0, %v618_v32 }
 0x202   :  { %v1403_v30 = vpop.eup %1402  ;;  %1422 = vrcp.f32 %v772_v24  ;;  %v739_v31 = vmul.f32 1.442695, %v684_v26 }
 0x203   :  { %v1405_v33 = vpop.eup %1404  ;;  %1424 = vrcp.f32 %v770_v27  ;;  %v735_v34 = vmul.f32 1.442695, %v682_v29  ;;  %v1316_v35 = vpop.f32.mrb[24].mxu1 }
 0x204   :  { %v1407_v36 = vpop.eup %1406  ;;  %1426 = vpow2.f32 %v737_v25  ;;  %v639_v37 = vadd.f32 %v1316_v35, %v1648_v18  ;;  %v630_v38 = vpop.f32.mrb[25].mxu1 }
 0x205   :  { %v1409_v39 = vpop.eup %1408  ;;  %v1111_v40 = vpack.c.bf16 %v1407_v36, %v1403_v30  ;;  %1428 = vpow2.f32 %v733_v28  ;;  %v631_v41 = vadd.f32 %v1648_v18, %v630_v38  ;;  %v1317_v42 = vpop.f32.mrb[26].mxu1 }
 0x206   :  { %v1411_v43 = vpop.eup %1410  ;;  %v1106_v44 = vpack.c.bf16 %v1409_v39, %v1405_v33  ;;  %1430 = vpow2.f32 %v739_v31  ;;  %v687_v45 = vsub.f32 0.0, %v639_v37  ;;  %v642_v46 = vadd.f32 %v1317_v42, %v1648_v18  ;;  %v633_v47 = vpop.f32.mrb[27].mxu1 }
 0x207   :  { %v1413_v48 = vpop.eup %1412  ;;  %1167 = vst [vmem:[%s1735_s5 + $0x28] sm:$0xff] %v1111_v40   ;;  %v775_v49 = vadd.f32 1.0, %v1411_v43  ;;  %1432 = vpow2.f32 %v735_v34  ;;  %v685_v50 = vsub.f32 0.0, %v631_v41  ;;  %v634_v51 = vadd.f32 %v1648_v18, %v633_v47 }
 0x208   :  { %v1415_v52 = vpop.eup %1414  ;;  %1166 = vst [vmem:[%s1735_s5 + $0x20] sm:$0xff] %v1106_v44   ;;  %v773_v53 = vadd.f32 1.0, %v1413_v48  ;;  %v688_v54 = vsub.f32 0.0, %v642_v46  ;;  %v745_v57 = vmul.f32 1.442695, %v687_v45 }
 0x209   :  { %v1417_v55 = vpop.eup %1416  ;;  %1434 = vrcp.f32 %v775_v49  ;;  %v776_v56 = vadd.f32 1.0, %v1415_v52  ;;  %v686_v58 = vsub.f32 0.0, %v634_v51  ;;  %v741_v61 = vmul.f32 1.442695, %v685_v50 }
 0x20a   :  { %v1419_v59 = vpop.eup %1418  ;;  %1436 = vrcp.f32 %v773_v53  ;;  %v774_v60 = vadd.f32 1.0, %v1417_v55  ;;  %v747_v63 = vmul.f32 1.442695, %v688_v54 }
 0x20b   :  { %v1421_v62 = vpop.eup %1420  ;;  %1438 = vrcp.f32 %v776_v56  ;;  %v1320_v0 = vpop.f32.mrb[28].mxu1  ;;  %v743_v2 = vmul.f32 1.442695, %v686_v58 }
 0x20c   :  { %v1423_v1 = vpop.eup %1422  ;;  %1440 = vrcp.f32 %v774_v60  ;;  %v655_v3 = vadd.f32 %v1320_v0, %v1648_v18  ;;  %v646_v4 = vpop.f32.mrb[29].mxu1 }
 0x20d   :  { %v1425_v5 = vpop.eup %1424  ;;  %v1121_v6 = vpack.c.bf16 %v1423_v1, %v1419_v59  ;;  %1442 = vpow2.f32 %v745_v57  ;;  %v647_v7 = vadd.f32 %v1648_v18, %v646_v4  ;;  %v1321_v8 = vpop.f32.mrb[30].mxu1 }
 0x20e   :  { %v1427_v9 = vpop.eup %1426  ;;  %v1116_v10 = vpack.c.bf16 %v1425_v5, %v1421_v62  ;;  %1444 = vpow2.f32 %v741_v61  ;;  %v691_v11 = vsub.f32 0.0, %v655_v3  ;;  %v658_v12 = vadd.f32 %v1321_v8, %v1648_v18  ;;  %v649_v13 = vpop.f32.mrb[31].mxu1 }
 0x20f   :  { %v1429_v14 = vpop.eup %1428  ;;  %1169 = vst [vmem:[%s1735_s5 + $0x38] sm:$0xff] %v1121_v6   ;;  %v779_v15 = vadd.f32 1.0, %v1427_v9  ;;  %1446 = vpow2.f32 %v747_v63  ;;  %v689_v16 = vsub.f32 0.0, %v647_v7  ;;  %v650_v17 = vadd.f32 %v1648_v18, %v649_v13 }
 0x210   :  { %v1431_v19 = vpop.eup %1430  ;;  %1168 = vst [vmem:[%s1735_s5 + $0x30] sm:$0xff] %v1116_v10   ;;  %v777_v20 = vadd.f32 1.0, %v1429_v14  ;;  %1448 = vpow2.f32 %v743_v2  ;;  %v692_v21 = vsub.f32 0.0, %v658_v12  ;;  %v753_v23 = vmul.f32 1.442695, %v691_v11 }
 0x211   :  { %v1433_v22 = vpop.eup %1432  ;;  %1450 = vrcp.f32 %v779_v15  ;;  %v780_v32 = vadd.f32 1.0, %v1431_v19  ;;  %v690_v24 = vsub.f32 0.0, %v650_v17  ;;  %v749_v26 = vmul.f32 1.442695, %v689_v16 }
 0x212   :  { %1452 = vrcp.f32 %v777_v20  ;;  %v778_v25 = vadd.f32 1.0, %v1433_v22  ;;  %v755_v28 = vmul.f32 1.442695, %v692_v21 }
 0x213   :  { %v1435_v27 = vpop.eup %1434  ;;  %1454 = vrcp.f32 %v780_v32  ;;  %v751_v29 = vmul.f32 1.442695, %v690_v24 }
 0x214   :  { %v1437_v18 = vpop.eup %1436  ;;  %1456 = vrcp.f32 %v778_v25 }
 0x215   :  { %v1439_v30 = vpop.eup %1438  ;;  %1458 = vpow2.f32 %v753_v23 }
 0x216   :  { %v1441_v31 = vpop.eup %1440  ;;  %v1131_v33 = vpack.c.bf16 %v1439_v30, %v1435_v27  ;;  %1460 = vpow2.f32 %v749_v26 }
 0x217   :  { %v1443_v34 = vpop.eup %1442  ;;  %v1126_v35 = vpack.c.bf16 %v1441_v31, %v1437_v18  ;;  %1462 = vpow2.f32 %v755_v28 }
 0x218   :  { %v1445_v36 = vpop.eup %1444  ;;  %1171 = vst [vmem:[%s1735_s5 + $0x48] sm:$0xff] %v1131_v33   ;;  %v783_v37 = vadd.f32 1.0, %v1443_v34  ;;  %1464 = vpow2.f32 %v751_v29 }
 0x219   :  { %v1447_v38 = vpop.eup %1446  ;;  %1170 = vst [vmem:[%s1735_s5 + $0x40] sm:$0xff] %v1126_v35   ;;  %v781_v39 = vadd.f32 1.0, %v1445_v36 }
 0x21a   :  { %v1449_v40 = vpop.eup %1448  ;;  %1466 = vrcp.f32 %v783_v37  ;;  %v784_v41 = vadd.f32 1.0, %v1447_v38 }
 0x21b   :  { %v1451_v42 = vpop.eup %1450  ;;  %1468 = vrcp.f32 %v781_v39  ;;  %v782_v43 = vadd.f32 1.0, %v1449_v40 }
 0x21c   :  { %v1453_v44 = vpop.eup %1452  ;;  %1470 = vrcp.f32 %v784_v41 }
 0x21d   :  { %v1455_v45 = vpop.eup %1454  ;;  %1472 = vrcp.f32 %v782_v43 }
 0x21e   :  { %v1457_v46 = vpop.eup %1456  ;;  %v1141_v47 = vpack.c.bf16 %v1455_v45, %v1451_v42 }
 0x21f   :  { %v1459_v48 = vpop.eup %1458  ;;  %v1136_v49 = vpack.c.bf16 %v1457_v46, %v1453_v44 }
 0x220   :  { %v1461_v50 = vpop.eup %1460  ;;  %1173 = vst [vmem:[%s1735_s5 + $0x58] sm:$0xff] %v1141_v47   ;;  %v787_v51 = vadd.f32 1.0, %v1459_v48 }
 0x221   :  { %v1463_v52 = vpop.eup %1462  ;;  %1172 = vst [vmem:[%s1735_s5 + $0x50] sm:$0xff] %v1136_v49   ;;  %v785_v53 = vadd.f32 1.0, %v1461_v50 }
 0x222   :  { %v1465_v54 = vpop.eup %1464  ;;  %1474 = vrcp.f32 %v787_v51  ;;  %v788_v55 = vadd.f32 1.0, %v1463_v52 }
 0x223   :  { %1476 = vrcp.f32 %v785_v53  ;;  %v786_v56 = vadd.f32 1.0, %v1465_v54 }
 0x224   :  { %v1467_v57 = vpop.eup %1466  ;;  %1478 = vrcp.f32 %v788_v55 }
 0x225   :  { %v1469_v58 = vpop.eup %1468  ;;  %1480 = vrcp.f32 %v786_v56 }
 0x226   :  { %v1471_v59 = vpop.eup %1470 }
 0x227   :  { %v1473_v60 = vpop.eup %1472  ;;  %v1151_v61 = vpack.c.bf16 %v1471_v59, %v1467_v57 }
 0x228   :  { %v1146_v62 = vpack.c.bf16 %v1473_v60, %v1469_v58 }
 0x229   :  { %1175 = vst [vmem:[%s1735_s5 + $0x68] sm:$0xff] %v1151_v61  }
 0x22a   :  { %1174 = vst [vmem:[%s1735_s5 + $0x60] sm:$0xff] %v1146_v62  }
 0x22c   :  { %v1475_v63 = vpop.eup %1474 }
 0x22d   :  { %v1477_v0 = vpop.eup %1476 }
 0x22e   :  { %v1479_v1 = vpop.eup %1478 }
 0x22f   :  { %v1481_v2 = vpop.eup %1480  ;;  %v1161_v3 = vpack.c.bf16 %v1479_v1, %v1475_v63 }
 0x230   :  { %v1156_v4 = vpack.c.bf16 %v1481_v2, %v1477_v0 }
 0x231   :  { %1177 = vst [vmem:[%s1735_s5 + $0x78] sm:$0xff] %v1161_v3  }
 0x232   :  { %1176 = vst [vmem:[%s1735_s5 + $0x70] sm:$0xff] %v1156_v4  }

</bundles_post_ra>
